<compile_context>
chip_gen: v7x
topology: tpu7x:2x2x1
jax: 0.10.0
libtpu: 0.0.40
codegen_flags: <defaults>
</compile_context>

<pallas_src>
import functools

import jax
import jax.numpy as jnp
from jax.experimental import pallas as pl
from jax.experimental.pallas import tpu as pltpu

INPUT_DIM = 447
OUTPUT_RANGE = 12.0
TB_MAX = 2048          # rows of x per grid step (multiple of 128)
SMALL_BATCH = 512      # at or below this, a single block covers the whole batch


def _don_kernel(x_ref, w_ref, b_ref, o_ref, *, output_range):
    # x_ref: (TB, D) VMEM (caller dtype), w_ref: (1, D) f32 VMEM (lane-dense row),
    # b_ref: (1, 1) f32 VMEM, o_ref: (TB, 1) f32 VMEM.
    x = x_ref[...].astype(jnp.float32)
    w = w_ref[...]                                     # (1, D) broadcasts over the TB rows
    # VPU multiply + XLU lane reduction, f32 accumulation.  MXU deliberately unused:
    # N=1 would use <1% of its columns and this kernel is HBM-bound on x anyway.
    lin = jnp.sum(x * w, axis=-1, keepdims=True) + b_ref[...]
    # Exact sigmoid (exp on the EUP, exact divide) -> matches torch.sigmoid closely.
    sig = 1.0 / (1.0 + jnp.exp(-lin))
    o_ref[...] = (sig * output_range).astype(o_ref.dtype)


def _round_up(v, m):
    return ((v + m - 1) // m) * m


def direct_nonlinear_nn(x, weight, bias, output_range=OUTPUT_RANGE, tb=TB_MAX):
    """x: (B, D), weight: (1, D) (PyTorch nn.Linear layout), bias: (1,). Returns (B, 1) f32."""
    B, D = x.shape
    w_row = jnp.asarray(weight, jnp.float32).reshape(1, D)   # keep lane-dense row, no transpose
    b = jnp.asarray(bias, jnp.float32).reshape(1, 1)

    if B <= SMALL_BATCH:
        tb_eff = B                                           # block == full dims is allowed
    else:
        # Big 128-aligned tile (amortizes the ~0.35 us per-step cost), but capped so the grid
        # keeps >= ~4 steps: both v7x TensorCores stay busy and the x pipeline stays full.
        tb_cap = max(128, (int(tb) // 128) * 128)
        tb_eff = min(tb_cap, _round_up(pl.cdiv(B, 4), 128))
    grid = (pl.cdiv(B, tb_eff),)                             # no jnp.pad: ragged last block masked

    kernel = functools.partial(_don_kernel, output_range=float(output_range))

    out = pl.pallas_call(
        kernel,
        out_shape=jax.ShapeDtypeStruct((B, 1), jnp.float32),
        grid=grid,
        in_specs=[
            pl.BlockSpec((tb_eff, D), lambda i: (i, 0)),     # x: streamed, double-buffered
            pl.BlockSpec((1, D), lambda i: (0, 0)),          # weight row: resident
            pl.BlockSpec((1, 1), lambda i: (0, 0)),          # bias scalar
        ],
        out_specs=pl.BlockSpec((tb_eff, 1), lambda i: (i, 0)),
        compiler_params=pltpu.CompilerParams(
            dimension_semantics=("parallel",),               # shard batch across TCs (v7x)
            vmem_limit_bytes=32 * 1024 * 1024,               # headroom for big tiles on v5e
        ),
    )(x, w_row, b)

    return out


if __name__ == "__main__":
    key = jax.random.PRNGKey(0)
    kx, kw, kb, kx2 = jax.random.split(key, 4)

    # Deterministic synthetic parameters (torch.nn.Linear(input_dim, 1) shapes).
    weight = jax.random.normal(kw, (1, INPUT_DIM), dtype=jnp.float32) * 0.05
    bias = jax.random.normal(kb, (1,), dtype=jnp.float32) * 0.05

    def ref_fn(xv):
        # Same math as torch: sigmoid(x @ W.T + b) * output_range, f32 throughout
        # (elementwise dot keeps the reference off any low-precision MXU default).
        lin = jnp.sum(xv * weight, axis=-1, keepdims=True) + bias
        return jax.nn.sigmoid(lin) * OUTPUT_RANGE

    # Case 1: small batch -> single block (block == full dims).
    B1 = 8
    x1 = jax.random.normal(kx, (B1, INPUT_DIM), dtype=jnp.float32)
    out1 = jax.block_until_ready(direct_nonlinear_nn(x1, weight, bias))
    assert out1.shape == (B1, 1)
    assert jnp.allclose(out1, ref_fn(x1), atol=1e-3, rtol=1e-3), "case1 mismatch"

    # Case 2: multi-step grid with a ragged final block (exercises masked boundary stores).
    B2 = 650
    x2 = jax.random.normal(kx2, (B2, INPUT_DIM), dtype=jnp.float32)
    out2 = jax.block_until_ready(direct_nonlinear_nn(x2, weight, bias, tb=128))
    assert out2.shape == (B2, 1)
    assert jnp.allclose(out2, ref_fn(x2), atol=1e-3, rtol=1e-3), "case2 mismatch"

    print("KERNEL_OK")
</pallas_src>

<mosaic_0001>
module attributes {stable_mosaic.version = 11 : i64} {
  func.func @_don_kernel(%arg0: i32, %arg1: memref<8x447xf32, #tpu.memory_space<vmem>>, %arg2: memref<1x447xf32, #tpu.memory_space<vmem>>, %arg3: memref<1x1xf32, #tpu.memory_space<vmem>>, %arg4: memref<8x1xf32, #tpu.memory_space<vmem>>) attributes {dimension_semantics = [#tpu.dimension_semantics<parallel>], iteration_bounds = array<i64: 1>, scalar_prefetch = 0 : i64, scratch_operands = 0 : i64, tpu.core_type = #tpu.core_type<tc>, window_params = [{transform_indices = @transform_0, window_bounds = array<i64: 8, 447>}, {pipeline_mode = #tpu.pipeline_mode<synchronous>, transform_indices = @transform_1, window_bounds = array<i64: 1, 447>}, {pipeline_mode = #tpu.pipeline_mode<synchronous>, transform_indices = @transform_2, window_bounds = array<i64: 1, 1>}, {transform_indices = @transform_3, window_bounds = array<i64: 8, 1>}]} {
    %c0 = arith.constant 0 : index
    %c0_0 = arith.constant 0 : index
    %0 = vector.load %arg1[%c0, %c0_0] : memref<8x447xf32, #tpu.memory_space<vmem>>, vector<8x447xf32>
    %c0_1 = arith.constant 0 : index
    %c0_2 = arith.constant 0 : index
    %1 = vector.load %arg2[%c0_1, %c0_2] : memref<1x447xf32, #tpu.memory_space<vmem>>, vector<1x447xf32>
    %2 = vector.broadcast %1 : vector<1x447xf32> to vector<8x447xf32>
    %3 = arith.mulf %0, %2 : vector<8x447xf32>
    %cst = arith.constant dense<0.000000e+00> : vector<8xf32>
    %4 = vector.multi_reduction <add>, %3, %cst [1] : vector<8x447xf32> to vector<8xf32>
    %5 = vector.shape_cast %4 : vector<8xf32> to vector<8x1xf32>
    %c0_3 = arith.constant 0 : index
    %c0_4 = arith.constant 0 : index
    %6 = vector.load %arg3[%c0_3, %c0_4] : memref<1x1xf32, #tpu.memory_space<vmem>>, vector<1x1xf32>
    %7 = vector.broadcast %6 : vector<1x1xf32> to vector<8x1xf32>
    %8 = arith.addf %5, %7 : vector<8x1xf32>
    %cst_5 = arith.constant 0.000000e+00 : f32
    %9 = vector.broadcast %cst_5 : f32 to vector<8x1xf32>
    %10 = arith.subf %9, %8 : vector<8x1xf32>
    %11 = math.exp %10 : vector<8x1xf32>
    %cst_6 = arith.constant 1.000000e+00 : f32
    %12 = vector.broadcast %cst_6 : f32 to vector<8x1xf32>
    %13 = arith.addf %12, %11 : vector<8x1xf32>
    %cst_7 = arith.constant 1.000000e+00 : f32
    %14 = vector.broadcast %cst_7 : f32 to vector<8x1xf32>
    %15 = arith.divf %14, %13 : vector<8x1xf32>
    %cst_8 = arith.constant 1.200000e+01 : f32
    %16 = vector.broadcast %cst_8 : f32 to vector<8x1xf32>
    %17 = arith.mulf %15, %16 : vector<8x1xf32>
    %c0_9 = arith.constant 0 : index
    %c0_10 = arith.constant 0 : index
    %18 = vector.load %arg4[%c0_9, %c0_10] : memref<8x1xf32, #tpu.memory_space<vmem>>, vector<8x1xf32>
    tpu.vector_store %arg4[%c0_9, %c0_10], %17 {strides = array<i32>} : memref<8x1xf32, #tpu.memory_space<vmem>>, vector<8x1xf32>,
    return
  }
  func.func @transform_0(%arg0: i32) -> (i32, i32) {
    %c0_i32 = arith.constant 0 : i32
    %c0_i32_0 = arith.constant 0 : i32
    return %arg0, %c0_i32 : i32, i32
  }
  func.func @transform_1(%arg0: i32) -> (i32, i32) {
    %c0_i32 = arith.constant 0 : i32
    %c0_i32_0 = arith.constant 0 : i32
    %c0_i32_1 = arith.constant 0 : i32
    return %c0_i32, %c0_i32_0 : i32, i32
  }
  func.func @transform_2(%arg0: i32) -> (i32, i32) {
    %c0_i32 = arith.constant 0 : i32
    %c0_i32_0 = arith.constant 0 : i32
    %c0_i32_1 = arith.constant 0 : i32
    return %c0_i32, %c0_i32_0 : i32, i32
  }
  func.func @transform_3(%arg0: i32) -> (i32, i32) {
    %c0_i32 = arith.constant 0 : i32
    %c0_i32_0 = arith.constant 0 : i32
    return %arg0, %c0_i32 : i32, i32
  }
}

</mosaic_0001>

<bundles_post_ra>
// kernel: tpu_custom_call.1
= control target key start
LH: loop header
LB: loop body
LE: loop exit
PB: predicated region body
PF: predicated region fallthrough
CT: control target
= control target key end

     0   :  { %s159_s0 = inlined_call_operand.hbm [shape: f32[8,447], index: 0, kind: input, shape index: {}]   ;;  %s160_s1 = inlined_call_operand.vmem [shape: f32[1,447], index: 1, kind: input, shape index: {}]   ;;  %s161_s2 = inlined_call_operand.<no memory space> [shape: f32[1,1], index: 2, kind: input, shape index: {}]   ;;  %s162_s3 = inlined_call_operand.vmem [shape: f32[8,1], index: 3, kind: output, shape index: {}]  }
   0x1   :  { %v8_v0 = vstv %s161_s2 }
   0x2   :  { %9 = vst [vmem:[#allocation2] sm:$0x1] %v8_v0 }
   0x3   :  { %10 = vsyncpa [#allocation4], 0  ;;  %s117_s14 = smov [#allocation3]   ;;  %s93_s18 = scalar_lea.hbm %s159_s0, 512 }
   0x4   :  { %s17_s15 = sshll.u32 %s117_s14, 4  ;;  %p94_p0 = scmp.ne.s32.totalorder %s159_s0, %s93_s18  ;;  %s18_s15 = int_to_ptr.vmem [resolvable:$true] %s17_s15 }
   0x5   :  { %p97_p1 = scmp.lt.u32.totalorder %s93_s18, %s159_s0 }
   0x7   :  { %p99_p2 = pnand %p97_p1, %p94_p0 }
   0x9   :  { %102 = shalt.err (!%p99_p2)
}
   0xa   :  { %s103_s2 = scalar_lea.vmem %s18_s15, 512  ;;  %p108_p4 = scmp.lt.s32.totalorder %s18_s15, %s18_s15 }
   0xb   :  { %p104_p3 = scmp.ne.s32.totalorder %s18_s15, %s103_s2  ;;  %p109_p5 = scmp.lt.s32.totalorder %s103_s2, %s103_s2 }
   0xd   :  { %p110_p6 = por %p109_p5, %p108_p4 }
   0xf   :  { %p111_p7 = pnand %p110_p6, %p104_p3 }
  0x11   :  { %114 = shalt.err (!%p111_p7)
}
  0x12   :  { %20 = dma.hbm_to_vmem [thread:$0]  %s159_s0, 512, %s18_s15, [#allocation4]  }
  0x13   :  { %115 = dma.done.wait [#allocation4], 512  }
  0x14   :  { %116 = vsyncadd [#allocation4], 4294966784  ;;  %v34_v1 = vlaneseq  ;;  %v28_v7 = vld [vmem:[#allocation3] sm:$0xff]  ;;  %v29_v8 = vld [vmem:[#allocation3 + $0x8] sm:$0xff]  ;;  %vm60_vm0 = vcmask 515072   ;;  %vm80_vm1 = vcmask 7168  }
  0x15   :  { %v30_v9 = vld [vmem:[#allocation3 + $0x10] sm:$0xff]  ;;  %v31_v10 = vld [vmem:[#allocation3 + $0x18] sm:$0xff] }
  0x16   :  { %v35_v2 = vshrl.u32 %v34_v1, 7  ;;  %v32_v11 = vld [vmem:[%s160_s1] sm:$0xf] }
  0x17   :  { %v87_v24 = vld [vmem:[#allocation2] ss:$0 sm:$0xff] }
  0x18   :  { %v36_v3 = vsub.s32 0, %v35_v2  ;;  %v40_v4 = vsub.s32 1, %v35_v2  ;;  %v44_v5 = vsub.s32 2, %v35_v2  ;;  %v48_v6 = vsub.s32 3, %v35_v2 }
  0x1a   :  { %v37_v12 = vrot.slane %v32_v11, %v36_v3  ;;  %v41_v13 = vrot.slane %v32_v11, %v40_v4  ;;  %v45_v14 = vrot.slane %v32_v11, %v44_v5  ;;  %v49_v15 = vrot.slane %v32_v11, %v48_v6 }
  0x1c   :  { %v54_v16 = vmul.f32 %v37_v12, %v28_v7  ;;  %v55_v17 = vmul.f32 %v41_v13, %v29_v8  ;;  %v56_v18 = vmul.f32 %v45_v14, %v30_v9  ;;  %v57_v19 = vmul.f32 %v49_v15, %v31_v10 }
  0x1e   :  { %v58_v20 = vadd.f32 %v55_v17, %v54_v16  ;;  %v61_v21 = vsel %vm60_vm0, %v57_v19, 0.0 }
  0x20   :  { %v59_v22 = vadd.f32 %v58_v20, %v56_v18 }
  0x22   :  { %v62_v23 = vadd.f32 %v61_v21, %v59_v22 }
  0x24   :  { %63 = vadd.xlane.f32.xlu0 %v62_v23 }
  0xb1   :  { %v64_v25 = vpop.xlane.xlu0 %63 }
  0xb2   :  { %v72_v26 = vadd.f32 %v87_v24, %v64_v25 }
  0xb4   :  { %v73_v27 = vsub.f32 0.0, %v72_v26 }
  0xb6   :  { %v74_v28 = vmul.f32 1.442695, %v73_v27 }
  0xb8   :  { %89 = vpow2.f32 %v74_v28 }
  0xc2   :  { %v90_v29 = vpop.eup %89 }
  0xc3   :  { %v76_v30 = vadd.f32 1.0, %v90_v29 }
  0xc5   :  { %91 = vrcp.f32 %v76_v30 }
  0xcf   :  { %v92_v31 = vpop.eup %91 }
  0xd0   :  { %v79_v32 = vmul.f32 12.0, %v92_v31 }
  0xd2   :  { %81 = vst.msk [vmem:[%s162_s3] sm:$0xff] %vm80_vm1, %v79_v32 }
  0xd3   :  { %86 = vsyncpa [#allocation4], 1 }

</bundles_post_ra>
